<compile_context>
chip_gen: v5e
topology: v5e:2x2
jax: 0.10.0
libtpu: 0.0.40
codegen_flags: <defaults>
</compile_context>

<pallas_src>
import jax
import jax.numpy as jnp
from jax.experimental import pallas as pl
from jax.experimental.pallas import tpu as pltpu


def _round_up(x, m):
    return ((x + m - 1) // m) * m


def _lyapunov_kernel(obs_ref, act_ref, w1o_ref, w1a_ref, b1_ref, w2_ref, b2_ref, o_ref):
    # Layer 1 as a split matmul: relu(obs @ W1[:obs] + act @ W1[obs:] + b1).
    # bf16 operands on the MXU, f32 accumulation; bias/ReLU in f32 on the VPU.
    h1 = jnp.dot(obs_ref[...], w1o_ref[...], preferred_element_type=jnp.float32)
    h1 = h1 + jnp.dot(act_ref[...], w1a_ref[...], preferred_element_type=jnp.float32)
    h1 = jnp.maximum(h1 + b1_ref[...], 0.0)                      # (TB, H1) f32

    # Layer 2: Linear + ReLU (output activation).
    h2 = jnp.dot(h1.astype(w2_ref.dtype), w2_ref[...],
                 preferred_element_type=jnp.float32)
    h2 = jnp.maximum(h2 + b2_ref[...], 0.0)                      # (TB, H2) f32

    # square -> sum over feature dim -> (TB, 1)
    o_ref[...] = jnp.sum(h2 * h2, axis=1, keepdims=True)


def lyapunov_critic_forward(obs, act, params, *, block_b=512):
    """Pallas-backed forward pass of LyapunovCritic.

    obs: (B, obs_dim) float32
    act: (B, act_dim) float32
    params: dict with w1 (obs+act, H1), b1 (1, H1), w2 (H1, H2), b2 (1, H2)
            (weights stored transposed w.r.t. torch.nn.Linear)
    returns: (B, 1) float32
    """
    B, obs_dim = obs.shape
    act_dim = act.shape[-1]
    w1, b1, w2, b2 = params["w1"], params["b1"], params["w2"], params["b2"]
    in_dim, h1_dim = w1.shape
    h2_dim = w2.shape[1]
    assert in_dim == obs_dim + act_dim

    cdt = jnp.bfloat16
    # Split W1 once at trace time -> no HBM-materialized concat([obs, act]).
    w1o = w1[:obs_dim, :].astype(cdt)
    w1a = w1[obs_dim:, :].astype(cdt)
    w2c = w2.astype(cdt)
    b1f = b1.astype(jnp.float32)
    b2f = b2.astype(jnp.float32)

    # Batch tile: multiple of 8 (sublane), capped so 2x double-buffered tiles
    # plus weights stay far under v7x's smaller VMEM as well as v5e/v6e's.
    tb = min(block_b, _round_up(B, 8))
    b_pad = _round_up(B, tb)
    if b_pad != B:
        pad = ((0, b_pad - B), (0, 0))
        obs = jnp.pad(obs, pad)
        act = jnp.pad(act, pad)
    obs_b = obs.astype(cdt)
    act_b = act.astype(cdt)

    grid = (b_pad // tb,)

    flops = 2 * b_pad * (in_dim * h1_dim + h1_dim * h2_dim) + 5 * b_pad * (h1_dim + h2_dim)
    bytes_accessed = (
        b_pad * in_dim * 2                       # bf16 activations in
        + b_pad * 4                              # f32 Lyapunov values out
        + (in_dim * h1_dim + h1_dim * h2_dim) * 2  # bf16 weights
        + (h1_dim + h2_dim) * 4                  # f32 biases
    )

    out = pl.pallas_call(
        _lyapunov_kernel,
        out_shape=jax.ShapeDtypeStruct((b_pad, 1), jnp.float32),
        grid_spec=pltpu.PrefetchScalarGridSpec(
            num_scalar_prefetch=0,
            grid=grid,
            in_specs=[
                pl.BlockSpec((tb, obs_dim), lambda i: (i, 0)),     # streamed
                pl.BlockSpec((tb, act_dim), lambda i: (i, 0)),     # streamed
                pl.BlockSpec((obs_dim, h1_dim), lambda i: (0, 0)),  # VMEM-resident
                pl.BlockSpec((act_dim, h1_dim), lambda i: (0, 0)),
                pl.BlockSpec((1, h1_dim), lambda i: (0, 0)),
                pl.BlockSpec((h1_dim, h2_dim), lambda i: (0, 0)),
                pl.BlockSpec((1, h2_dim), lambda i: (0, 0)),
            ],
            out_specs=pl.BlockSpec((tb, 1), lambda i: (i, 0)),
        ),
        compiler_params=pltpu.CompilerParams(
            dimension_semantics=("parallel",),   # shard batch tiles across TCs (v7x)
        ),
        cost_estimate=pl.CostEstimate(
            flops=flops, transcendentals=0, bytes_accessed=bytes_accessed),
    )(obs_b, act_b, w1o, w1a, b1f, w2c, b2f)

    return out[:B]


def init_params(key, obs_dim, act_dim, hidden_sizes):
    """Deterministic synthetic parameter init (shapes match nn.Linear, transposed)."""
    sizes = [obs_dim + act_dim] + list(hidden_sizes)
    assert len(sizes) == 3, "this script instantiates two Linear layers"
    k1, k2, k3, k4 = jax.random.split(key, 4)
    w1 = jax.random.normal(k1, (sizes[0], sizes[1]), jnp.float32) * 0.1
    b1 = jax.random.normal(k2, (1, sizes[1]), jnp.float32) * 0.1
    w2 = jax.random.normal(k3, (sizes[1], sizes[2]), jnp.float32) * 0.1
    b2 = jax.random.normal(k4, (1, sizes[2]), jnp.float32) * 0.1
    return {"w1": w1, "b1": b1, "w2": w2, "b2": b2}


def reference_forward(obs, act, params):
    """Pure-JAX f32 reference for correctness checking."""
    x = jnp.concatenate([obs, act], axis=-1)
    h1 = jnp.maximum(x @ params["w1"] + params["b1"], 0.0)
    h2 = jnp.maximum(h1 @ params["w2"] + params["b2"], 0.0)
    return jnp.sum(h2 * h2, axis=1, keepdims=True)


if __name__ == "__main__":
    key = jax.random.PRNGKey(0)
    k_obs, k_act, k_par, k_obs2, k_act2 = jax.random.split(key, 5)

    obs_dim, act_dim = 8, 4
    hidden_sizes = [32, 32]
    params = init_params(k_par, obs_dim, act_dim, hidden_sizes)

    fwd = jax.jit(lyapunov_critic_forward)

    # Small case (module-scale shapes).
    B = 2
    obs = jax.random.normal(k_obs, (B, obs_dim), jnp.float32)
    act = jax.random.normal(k_act, (B, act_dim), jnp.float32)
    out = jax.block_until_ready(fwd(obs, act, params))
    ref = reference_forward(obs, act, params)
    assert out.shape == (B, 1), out.shape
    # bf16 matmul operands -> relaxed tolerance vs. the f32 reference.
    assert jnp.allclose(out, ref, atol=5e-2, rtol=5e-2), (out, ref)
    assert bool(jnp.all(out >= 0.0))

    # Multi-tile case: exercises the batch grid, padding and parallel axis.
    B2 = 1000
    obs2 = jax.random.normal(k_obs2, (B2, obs_dim), jnp.float32)
    act2 = jax.random.normal(k_act2, (B2, act_dim), jnp.float32)
    out2 = jax.block_until_ready(fwd(obs2, act2, params))
    ref2 = reference_forward(obs2, act2, params)
    assert out2.shape == (B2, 1), out2.shape
    assert jnp.allclose(out2, ref2, atol=5e-2, rtol=5e-2)

    print("KERNEL_OK")
</pallas_src>

<mosaic_0001>
module attributes {stable_mosaic.version = 11 : i64} {
  func.func @_lyapunov_kernel(%arg0: i32, %arg1: memref<8x8xbf16, #tpu.memory_space<vmem>>, %arg2: memref<8x4xbf16, #tpu.memory_space<vmem>>, %arg3: memref<8x32xbf16, #tpu.memory_space<vmem>>, %arg4: memref<4x32xbf16, #tpu.memory_space<vmem>>, %arg5: memref<1x32xf32, #tpu.memory_space<vmem>>, %arg6: memref<32x32xbf16, #tpu.memory_space<vmem>>, %arg7: memref<1x32xf32, #tpu.memory_space<vmem>>, %arg8: memref<8x1xf32, #tpu.memory_space<vmem>>) attributes {dimension_semantics = [#tpu.dimension_semantics<parallel>], iteration_bounds = array<i64: 1>, scalar_prefetch = 0 : i64, scratch_operands = 0 : i64, tpu.core_type = #tpu.core_type<tc>, window_params = [{transform_indices = @transform_0, window_bounds = array<i64: 8, 8>}, {transform_indices = @transform_1, window_bounds = array<i64: 8, 4>}, {pipeline_mode = #tpu.pipeline_mode<synchronous>, transform_indices = @transform_2, window_bounds = array<i64: 8, 32>}, {pipeline_mode = #tpu.pipeline_mode<synchronous>, transform_indices = @transform_3, window_bounds = array<i64: 4, 32>}, {pipeline_mode = #tpu.pipeline_mode<synchronous>, transform_indices = @transform_4, window_bounds = array<i64: 1, 32>}, {pipeline_mode = #tpu.pipeline_mode<synchronous>, transform_indices = @transform_5, window_bounds = array<i64: 32, 32>}, {pipeline_mode = #tpu.pipeline_mode<synchronous>, transform_indices = @transform_6, window_bounds = array<i64: 1, 32>}, {transform_indices = @transform_7, window_bounds = array<i64: 8, 1>}]} {
    %c0 = arith.constant 0 : index
    %c0_0 = arith.constant 0 : index
    %0 = vector.load %arg1[%c0, %c0_0] : memref<8x8xbf16, #tpu.memory_space<vmem>>, vector<8x8xbf16>
    %c0_1 = arith.constant 0 : index
    %c0_2 = arith.constant 0 : index
    %1 = vector.load %arg3[%c0_1, %c0_2] : memref<8x32xbf16, #tpu.memory_space<vmem>>, vector<8x32xbf16>
    %cst = arith.constant dense<0.000000e+00> : vector<8x32xf32>
    %2 = tpu.matmul %0, %1, %cst {dimension_numbers = #tpu.dot_dimension_numbers<[1], [0], [0], [1], [0, 0, 1, 1], [], []>} : vector<8x8xbf16>, vector<8x32xbf16>, vector<8x32xf32> -> vector<8x32xf32>
    %c0_3 = arith.constant 0 : index
    %c0_4 = arith.constant 0 : index
    %3 = vector.load %arg2[%c0_3, %c0_4] : memref<8x4xbf16, #tpu.memory_space<vmem>>, vector<8x4xbf16>
    %c0_5 = arith.constant 0 : index
    %c0_6 = arith.constant 0 : index
    %4 = vector.load %arg4[%c0_5, %c0_6] : memref<4x32xbf16, #tpu.memory_space<vmem>>, vector<4x32xbf16>
    %cst_7 = arith.constant dense<0.000000e+00> : vector<8x32xf32>
    %5 = tpu.matmul %3, %4, %cst_7 {dimension_numbers = #tpu.dot_dimension_numbers<[1], [0], [0], [1], [0, 0, 1, 1], [], []>} : vector<8x4xbf16>, vector<4x32xbf16>, vector<8x32xf32> -> vector<8x32xf32>
    %6 = arith.addf %2, %5 : vector<8x32xf32>
    %c0_8 = arith.constant 0 : index
    %c0_9 = arith.constant 0 : index
    %7 = vector.load %arg5[%c0_8, %c0_9] : memref<1x32xf32, #tpu.memory_space<vmem>>, vector<1x32xf32>
    %8 = vector.broadcast %7 : vector<1x32xf32> to vector<8x32xf32>
    %9 = arith.addf %6, %8 : vector<8x32xf32>
    %cst_10 = arith.constant 0.000000e+00 : f32
    %10 = vector.broadcast %cst_10 : f32 to vector<8x32xf32>
    %11 = arith.maximumf %9, %10 : vector<8x32xf32>
    %12 = arith.truncf %11 : vector<8x32xf32> to vector<8x32xbf16>
    %c0_11 = arith.constant 0 : index
    %c0_12 = arith.constant 0 : index
    %13 = vector.load %arg6[%c0_11, %c0_12] : memref<32x32xbf16, #tpu.memory_space<vmem>>, vector<32x32xbf16>
    %cst_13 = arith.constant dense<0.000000e+00> : vector<8x32xf32>
    %14 = tpu.matmul %12, %13, %cst_13 {dimension_numbers = #tpu.dot_dimension_numbers<[1], [0], [0], [1], [0, 0, 1, 1], [], []>} : vector<8x32xbf16>, vector<32x32xbf16>, vector<8x32xf32> -> vector<8x32xf32>
    %c0_14 = arith.constant 0 : index
    %c0_15 = arith.constant 0 : index
    %15 = vector.load %arg7[%c0_14, %c0_15] : memref<1x32xf32, #tpu.memory_space<vmem>>, vector<1x32xf32>
    %16 = vector.broadcast %15 : vector<1x32xf32> to vector<8x32xf32>
    %17 = arith.addf %14, %16 : vector<8x32xf32>
    %cst_16 = arith.constant 0.000000e+00 : f32
    %18 = vector.broadcast %cst_16 : f32 to vector<8x32xf32>
    %19 = arith.maximumf %17, %18 : vector<8x32xf32>
    %20 = arith.mulf %19, %19 : vector<8x32xf32>
    %cst_17 = arith.constant dense<0.000000e+00> : vector<8xf32>
    %21 = vector.multi_reduction <add>, %20, %cst_17 [1] : vector<8x32xf32> to vector<8xf32>
    %22 = vector.shape_cast %21 : vector<8xf32> to vector<8x1xf32>
    %c0_18 = arith.constant 0 : index
    %c0_19 = arith.constant 0 : index
    %23 = vector.load %arg8[%c0_18, %c0_19] : memref<8x1xf32, #tpu.memory_space<vmem>>, vector<8x1xf32>
    tpu.vector_store %arg8[%c0_18, %c0_19], %22 {strides = array<i32>} : memref<8x1xf32, #tpu.memory_space<vmem>>, vector<8x1xf32>,
    return
  }
  func.func @transform_0(%arg0: i32) -> (i32, i32) {
    %c0_i32 = arith.constant 0 : i32
    %c0_i32_0 = arith.constant 0 : i32
    return %arg0, %c0_i32 : i32, i32
  }
  func.func @transform_1(%arg0: i32) -> (i32, i32) {
    %c0_i32 = arith.constant 0 : i32
    %c0_i32_0 = arith.constant 0 : i32
    return %arg0, %c0_i32 : i32, i32
  }
  func.func @transform_2(%arg0: i32) -> (i32, i32) {
    %c0_i32 = arith.constant 0 : i32
    %c0_i32_0 = arith.constant 0 : i32
    %c0_i32_1 = arith.constant 0 : i32
    return %c0_i32, %c0_i32_0 : i32, i32
  }
  func.func @transform_3(%arg0: i32) -> (i32, i32) {
    %c0_i32 = arith.constant 0 : i32
    %c0_i32_0 = arith.constant 0 : i32
    %c0_i32_1 = arith.constant 0 : i32
    return %c0_i32, %c0_i32_0 : i32, i32
  }
  func.func @transform_4(%arg0: i32) -> (i32, i32) {
    %c0_i32 = arith.constant 0 : i32
    %c0_i32_0 = arith.constant 0 : i32
    %c0_i32_1 = arith.constant 0 : i32
    return %c0_i32, %c0_i32_0 : i32, i32
  }
  func.func @transform_5(%arg0: i32) -> (i32, i32) {
    %c0_i32 = arith.constant 0 : i32
    %c0_i32_0 = arith.constant 0 : i32
    %c0_i32_1 = arith.constant 0 : i32
    return %c0_i32, %c0_i32_0 : i32, i32
  }
  func.func @transform_6(%arg0: i32) -> (i32, i32) {
    %c0_i32 = arith.constant 0 : i32
    %c0_i32_0 = arith.constant 0 : i32
    %c0_i32_1 = arith.constant 0 : i32
    return %c0_i32, %c0_i32_0 : i32, i32
  }
  func.func @transform_7(%arg0: i32) -> (i32, i32) {
    %c0_i32 = arith.constant 0 : i32
    %c0_i32_0 = arith.constant 0 : i32
    return %arg0, %c0_i32 : i32, i32
  }
}

</mosaic_0001>

<bundles_post_ra>
// kernel: lyapunov_critic_forward.1
= control target key start
LH: loop header
LB: loop body
LE: loop exit
PB: predicated region body
PF: predicated region fallthrough
CT: control target
= control target key end

     0   :  { %vm35_vm0 = vcmask 1041408   ;;  %vm56_vm1 = vcmask 1043456   ;;  %vm31_vm2 = vcmask 31744   ;;  %vm52_vm3 = vcmask 64512   ;;  %s210_s3 = inlined_call_operand.vmem [shape: bf16[4,32], index: 3, kind: input, shape index: {}]   ;;  %s211_s2 = inlined_call_operand.vmem [shape: bf16[8,32], index: 2, kind: input, shape index: {}]   ;;  %s212_s1 = inlined_call_operand.vmem [shape: bf16[8,4], index: 1, kind: input, shape index: {}]   ;;  %s213_s0 = inlined_call_operand.vmem [shape: bf16[8,8], index: 0, kind: input, shape index: {}]   ;;  %s214_s4 = inlined_call_operand.vmem [shape: f32[1,32], index: 4, kind: input, shape index: {}]   ;;  %s215_s6 = inlined_call_operand.vmem [shape: f32[1,32], index: 6, kind: input, shape index: {}]   ;;  %s216_s5 = inlined_call_operand.vmem [shape: bf16[32,32], index: 5, kind: input, shape index: {}]   ;;  %s217_s7 = inlined_call_operand.vmem [shape: f32[8,1], index: 7, kind: output, shape index: {}]  }
   0x1   :  { %v30_v0 = vld [vmem:[%s210_s3] sm:$0x3]  ;;  %v140_v6 = vld [vmem:[%s216_s5 + $0x8] sm:$0xff]  ;;  %vm100_vm4 = vcmask 261120   ;;  %vm122_vm5 = vcmask 7168  }
   0x2   :  { %v28_v1 = vld [vmem:[%s211_s2] sm:$0xf]  ;;  %v37_v2 = vsel %vm35_vm0, %v30_v0, 0  ;;  %110 = vmatpush.bf16.msra.mxu2 %v140_v6 }
   0x3   :  { %v58_v3 = vsel %vm56_vm1, %v28_v1, 0  ;;  %46 = vmatpush.bf16.msra.mxu0 %v37_v2  ;;  %v29_v4 = vld [vmem:[%s212_s1] sm:$0xf] }
   0x4   :  { %67 = vmatpush.bf16.msra.mxu1 %v58_v3  ;;  %v27_v5 = vld [vmem:[%s213_s0] sm:$0xf] }
   0x5   :  { %v139_v7 = vld [vmem:[%s216_s5] sm:$0xff] }
   0x6   :  { %128 = vmatmul.msk.bf16.vlgmr.msra.gmra.mxu0 %vm31_vm2, %v29_v4  ;;  %111 = vmatpush.bf16.msra.mxu2 %v139_v7  ;;  %v141_v8 = vld [vmem:[%s214_s4] ss:$0 sm:$0xff] }
   0x7   :  { %129 = vmatmul.msk.bf16.vlgmr.msra.gmra.mxu1 %vm52_vm3, %v27_v5  ;;  %v142_v17 = vld [vmem:[%s215_s6] ss:$0 sm:$0xff] }
  0x83   :  { %v48_v9 = vpop.f32.mrf.mxu0 }
  0x84   :  { %v69_v10 = vpop.f32.mrf.mxu1 }
  0x85   :  { %v70_v11 = vadd.f32 %v69_v10, %v48_v9 }
  0x87   :  { %v77_v12 = vadd.f32 %v141_v8, %v70_v11 }
  0x89   :  { %v78_v13 = vmax.f32 %v77_v12, 0.0 }
  0x8b   :  { %v79_v14 = vpack.c.bf16 %v78_v13, %v78_v13  ;;  %v50_v15 = vpop.f32.mrf.mxu0 }
  0x8c   :  { %v71_v16 = vpop.f32.mrf.mxu1 }
  0x8d   :  { %138 = vmatmul.msk.bf16.vlgmr.msra.gmra.mxu2 %vm100_vm4, %v79_v14 }
 0x110   :  { %v113_v18 = vpop.f32.mrf.mxu2 }
 0x111   :  { %v114_v19 = vadd.f32 %v142_v17, %v113_v18 }
 0x113   :  { %v117_v20 = vmax.f32 %v114_v19, 0.0 }
 0x115   :  { %v118_v21 = vmul.f32 %v117_v20, %v117_v20 }
 0x117   :  { %v119_v22 = vsel %vm100_vm4, %v118_v21, 0.0 }
 0x118   :  { %v115_v23 = vpop.f32.mrf.mxu2  ;;  %120 = vadd.xlane.f32.xlu0 %v119_v22 }
 0x18b   :  { %v121_v24 = vpop.xlane.xlu0 %120 }
 0x18c   :  { %123 = vst.msk [vmem:[%s217_s7] sm:$0xff] %vm122_vm5, %v121_v24 }

</bundles_post_ra>
